<compile_context>
chip_gen: v6e
topology: v6e:2x2x1
jax: 0.10.0
libtpu: 0.0.40
codegen_flags: <defaults>
</compile_context>

<pallas_src>
import jax
import jax.numpy as jnp
from jax import lax
from jax.experimental import pallas as pl
from jax.experimental.pallas import tpu as pltpu


PATCH = 4
D_FEAT = 32     # joint embedding dim d
CTX_DIM = 32    # text token embedding dim
N_PROMPTS = 2   # cfg.TRAINER.PLOT.N
N_CTX = 4
SEQ_LEN = 8     # 1 prefix + n_ctx + suffix(3)

OT_EPS = 0.1
OT_MAX_ITER = 100
OT_THRESH = 0.01      # reference convergence threshold on mean|dr|
OT_CHECK_EVERY = 10   # amortize the convergence check every N Sinkhorn iters


# ----------------------------------------------------------------------------
# fused forward kernel (one grid step == one image)
# ----------------------------------------------------------------------------
def _make_fused_kernel(M, Np, n_cls, eps, max_iter, check_every, thresh):
    """patch-embed -> L2 norm -> LayerNorm(EOT rows) -> text proj -> L2 norm
    -> per-prompt similarity (MXU, M on lanes) -> Sinkhorn OT -> logits2 row."""
    inv_M = 1.0 / M
    inv_N = 1.0 / Np
    inv_eps = 1.0 / eps
    n_chunks = -(-max_iter // check_every)

    def kernel(flat_ref, wp_ref, bp_ref, xe_ref, g_ref, beta_ref, tp_ref,
               ls_ref, o_ref):
        f32 = jnp.float32
        bf16 = jnp.bfloat16

        # ---------- image (this step's batch element): patch embed + L2 norm --
        flat = flat_ref[0]                                           # (M, pdim)
        feat = jnp.dot(flat.astype(bf16), wp_ref[...].astype(bf16),
                       preferred_element_type=f32) + bp_ref[...]     # (M, d)
        img = feat * lax.rsqrt(
            jnp.maximum(jnp.sum(feat * feat, axis=-1, keepdims=True), 1e-24))
        img_bf = img.astype(bf16)

        # ---------- text per prompt: LayerNorm -> project -> L2 norm -> sim ---
        # Np is a tiny static constant; each iteration only indexes the *outer*
        # axis of xe_ref (free) and emits one (n_cls, d)x(d, M) MXU dot.
        # jnp.stack adds a new leading axis, so sim/K carry Np as an outer axis
        # and the Sinkhorn loop never slices the sublane axis (no relayouts).
        gamma = g_ref[...]
        beta = beta_ref[...]
        tp_bf = tp_ref[...].astype(bf16)
        sims = []
        for n in range(Np):
            xe = xe_ref[n].astype(f32)                               # (n_cls, ctx)
            mu = jnp.mean(xe, axis=-1, keepdims=True)
            var = jnp.mean((xe - mu) ** 2, axis=-1, keepdims=True)
            xln = (xe - mu) * lax.rsqrt(var + 1e-5) * gamma + beta
            txt = jnp.dot(xln.astype(bf16), tp_bf,
                          preferred_element_type=f32)                # (n_cls, d)
            txt = txt * lax.rsqrt(
                jnp.maximum(jnp.sum(txt * txt, axis=-1, keepdims=True), 1e-24))
            s = lax.dot_general(txt.astype(bf16), img_bf,
                                (((1,), (1,)), ((), ())),
                                preferred_element_type=f32)          # (n_cls, M)
            sims.append(s)
        sim3 = jnp.stack(sims, axis=0)                               # (Np, n_cls, M)

        # ---------- Sinkhorn OT (f32; M on lanes, n_cls on sublanes, Np outer) -
        K3 = jnp.exp((sim3 - 1.0) * inv_eps)                         # exp(-(1-sim)/eps)

        def one_iter(r, cs):
            # r[c,m] = (1/M) / sum_n K[n,c,m] * c[n,c]   (exact div: Kc can be ~2e-9)
            Kc = jnp.sum(K3 * cs, axis=0)                            # (n_cls, M)
            r = inv_M / Kc
            # c[n,c] = (1/N) / sum_m K[n,c,m] * r[c,m]   (denominator is O(1/N))
            KTr = jnp.sum(K3 * r[None, ...], axis=-1, keepdims=True)  # (Np, n_cls, 1)
            cs = inv_N * pl.reciprocal(KTr, approx=True)              # EUP recip
            return r, cs

        def chunk(carry):
            it, _, r, cs = carry
            r_prev = r
            for _ in range(check_every):        # fully unrolled chunk (LLO visibility)
                r, cs = one_iter(r, cs)
            # amortized version of the reference's per-iteration mean|dr| check
            err = jnp.mean(jnp.abs(r - r_prev))
            return it + 1, err, r, cs

        def keep_going(carry):
            it, err, _, _ = carry
            return jnp.logical_and(it < n_chunks, err >= thresh)

        r0 = jnp.ones((n_cls, M), f32)
        c0 = jnp.ones((Np, n_cls, 1), f32)
        _, _, r, cs = lax.while_loop(
            keep_going, chunk, (jnp.int32(0), jnp.float32(1e30), r0, c0))

        # ---------- OT objective: sum_{n,m} (r c^T * K) * sim ------------------
        # the cs broadcast is factored out of the (n_cls, M) product.
        pp = jnp.sum((r[None, ...] * K3) * sim3, axis=-1, keepdims=True)  # (Np,n_cls,1)
        s_c = jnp.sum(cs * pp, axis=0)                                    # (n_cls, 1)

        # logit_scale is an SMEM scalar; exp is done on a (1,1) vreg (EUP).
        scale = jnp.exp(jnp.full((1, 1), ls_ref[0, 0], f32))
        # TODO(synk): at real n_cls, pad/arrange the output so the lane axis is a
        # multiple of 128 (lane-dense store) instead of this tiny masked store.
        o_ref[...] = (s_c * scale)[None].astype(o_ref.dtype)              # (1,n_cls,1)

    return kernel


# ----------------------------------------------------------------------------
# CustomCLIP forward (inference path, label=None, dataset != 'ImageNet')
# ----------------------------------------------------------------------------
def custom_clip_forward(params, image):
    b = image.shape[0]
    C, H, W = image.shape[1:]
    P = PATCH

    # ---- image encoder stub: patch extraction (layout plumbing, stays in XLA)
    patches = (
        image.reshape(b, C, H // P, P, W // P, P)
        .transpose(0, 2, 4, 1, 3, 5)
        .reshape(b, (H // P) * (W // P), C * P * P)
    )
    M = patches.shape[1]
    pdim = C * P * P

    # ---- prompt learner: assemble prompts (parameter-only preprocessing) ----
    ctx = params["ctx"]                                      # (Np, n_ctx, ctx_dim)
    Np, n_ctx, ctx_dim = ctx.shape
    n_cls = params["token_prefix"].shape[0] // Np
    ctx_e = jnp.broadcast_to(ctx[None], (n_cls, Np, n_ctx, ctx_dim))
    ctx_e = jnp.transpose(ctx_e, (1, 0, 2, 3)).reshape(Np * n_cls, n_ctx, ctx_dim)
    prompts = jnp.concatenate(
        [params["token_prefix"], ctx_e, params["token_suffix"]], axis=1
    )                                                        # (Np*n_cls, seq, ctx_dim)

    # ---- text encoder prologue ----------------------------------------------
    # TODO(synk): CLIP text transformer blocks omitted (identity), so the EOT
    # rows are gathered *before* ln_final — LayerNorm then runs on Np*n_cls rows
    # instead of Np*n_cls*seq rows.
    x = prompts + params["pos_emb"][None]                    # + positional embedding
    L = x.shape[0]
    eot = jnp.argmax(params["tokenized_prompts"], axis=-1)   # EOT token index
    x_eot = x[jnp.arange(L), eot]                            # (Np*n_cls, ctx_dim)
    x_eot3 = x_eot.reshape(Np, n_cls, ctx_dim)               # prompt axis -> outer

    d = params["text_proj"].shape[1]

    # NOTE: the pooled-logits branch of the reference (image_feature_pool @
    # text_feature_pool.T) is dead for dataset != 'ImageNet' and is not computed.
    # TODO(synk): at real CLIP sizes additionally tile the n_cls axis, size the
    # per-block sim+K+state working set for v7x's 64 MiB VMEM and set
    # pltpu.CompilerParams(vmem_limit_bytes=...) explicitly.
    kernel = _make_fused_kernel(M=M, Np=Np, n_cls=n_cls, eps=OT_EPS,
                                max_iter=OT_MAX_ITER,
                                check_every=OT_CHECK_EVERY, thresh=OT_THRESH)

    out3 = pl.pallas_call(
        kernel,
        out_shape=jax.ShapeDtypeStruct((b, n_cls, 1), jnp.float32),
        grid=(b,),
        in_specs=[
            pl.BlockSpec((1, M, pdim), lambda i: (i, 0, 0)),          # this image's patches
            pl.BlockSpec((pdim, d), lambda i: (0, 0)),                # w_patch
            pl.BlockSpec((1, d), lambda i: (0, 0)),                   # b_patch
            pl.BlockSpec((Np, n_cls, ctx_dim), lambda i: (0, 0, 0)),  # EOT token rows
            pl.BlockSpec((1, ctx_dim), lambda i: (0, 0)),             # ln gamma
            pl.BlockSpec((1, ctx_dim), lambda i: (0, 0)),             # ln beta
            pl.BlockSpec((ctx_dim, d), lambda i: (0, 0)),             # text_projection
            pl.BlockSpec(memory_space=pltpu.MemorySpace.SMEM),        # logit_scale scalar
        ],
        out_specs=pl.BlockSpec((1, n_cls, 1), lambda i: (i, 0, 0)),
        compiler_params=pltpu.CompilerParams(
            dimension_semantics=("parallel",)),
    )(
        patches,
        params["w_patch"],
        params["b_patch"].reshape(1, d),
        x_eot3,
        params["ln_g"].reshape(1, ctx_dim),
        params["ln_b"].reshape(1, ctx_dim),
        params["text_proj"],
        params["logit_scale"].reshape(1, 1),
    )
    return out3.reshape(b, n_cls)


# ----------------------------------------------------------------------------
# deterministic parameter construction + example run
# ----------------------------------------------------------------------------
def make_params(key):
    ks = jax.random.split(key, 10)
    n_cls = 4
    suffix_len = SEQ_LEN - 1 - N_CTX
    patch_dim = 3 * PATCH * PATCH
    tokenized = jnp.tile(
        jnp.arange(SEQ_LEN, dtype=jnp.int32)[None], (N_PROMPTS * n_cls, 1)
    )
    tokenized = tokenized.at[:, SEQ_LEN - 2].set(1000)  # EOT token position
    return {
        "w_patch": 0.05 * jax.random.normal(ks[0], (patch_dim, D_FEAT), jnp.float32),
        "b_patch": jnp.zeros((D_FEAT,), jnp.float32),
        "ctx": 0.02 * jax.random.normal(ks[1], (N_PROMPTS, N_CTX, CTX_DIM), jnp.float32),
        "token_prefix": 0.02
        * jax.random.normal(ks[2], (N_PROMPTS * n_cls, 1, CTX_DIM), jnp.float32),
        "token_suffix": 0.02
        * jax.random.normal(ks[3], (N_PROMPTS * n_cls, suffix_len, CTX_DIM), jnp.float32),
        "pos_emb": 0.01 * jax.random.normal(ks[4], (SEQ_LEN, CTX_DIM), jnp.float32),
        "ln_g": jnp.ones((CTX_DIM,), jnp.float32),
        "ln_b": jnp.zeros((CTX_DIM,), jnp.float32),
        "text_proj": (CTX_DIM ** -0.5)
        * jax.random.normal(ks[5], (CTX_DIM, D_FEAT), jnp.float32),
        "tokenized_prompts": tokenized,
        "logit_scale": jnp.asarray(jnp.log(1.0 / 0.07), jnp.float32),
    }


if __name__ == "__main__":
    key = jax.random.PRNGKey(0)
    k_img, k_par = jax.random.split(key)
    params = make_params(k_par)
    # layout: NCHW image, like the PyTorch module
    image = jax.random.normal(k_img, (2, 3, 16, 16), jnp.float32)

    fwd = jax.jit(custom_clip_forward)
    logits2 = jax.block_until_ready(fwd(params, image))

    assert logits2.shape == (2, 4), logits2.shape
    assert bool(jnp.all(jnp.isfinite(logits2)))
    print("KERNEL_OK")
</pallas_src>

<mosaic_0001>
module attributes {stable_mosaic.version = 11 : i64} {
  func.func @kernel(%arg0: i32, %arg1: memref<1x16x48xf32, #tpu.memory_space<vmem>>, %arg2: memref<48x32xf32, #tpu.memory_space<vmem>>, %arg3: memref<1x32xf32, #tpu.memory_space<vmem>>, %arg4: memref<2x4x32xf32, #tpu.memory_space<vmem>>, %arg5: memref<1x32xf32, #tpu.memory_space<vmem>>, %arg6: memref<1x32xf32, #tpu.memory_space<vmem>>, %arg7: memref<32x32xf32, #tpu.memory_space<vmem>>, %arg8: memref<1x1xf32, #tpu.memory_space<smem>>, %arg9: memref<1x4x1xf32, #tpu.memory_space<vmem>>) attributes {dimension_semantics = [#tpu.dimension_semantics<parallel>], iteration_bounds = array<i64: 2>, scalar_prefetch = 0 : i64, scratch_operands = 0 : i64, tpu.core_type = #tpu.core_type<tc>, window_params = [{transform_indices = @transform_0, window_bounds = array<i64: 1, 16, 48>}, {pipeline_mode = #tpu.pipeline_mode<synchronous>, transform_indices = @transform_1, window_bounds = array<i64: 48, 32>}, {pipeline_mode = #tpu.pipeline_mode<synchronous>, transform_indices = @transform_2, window_bounds = array<i64: 1, 32>}, {pipeline_mode = #tpu.pipeline_mode<synchronous>, transform_indices = @transform_3, window_bounds = array<i64: 2, 4, 32>}, {pipeline_mode = #tpu.pipeline_mode<synchronous>, transform_indices = @transform_4, window_bounds = array<i64: 1, 32>}, {pipeline_mode = #tpu.pipeline_mode<synchronous>, transform_indices = @transform_5, window_bounds = array<i64: 1, 32>}, {pipeline_mode = #tpu.pipeline_mode<synchronous>, transform_indices = @transform_6, window_bounds = array<i64: 32, 32>}, {transform_indices = @transform_7, window_bounds = array<i64: 1, 1>}, {transform_indices = @transform_8, window_bounds = array<i64: 1, 4, 1>}]} {
    %c0 = arith.constant 0 : index
    %c0_0 = arith.constant 0 : index
    %c0_1 = arith.constant 0 : index
    %0 = vector.load %arg1[%c0, %c0_0, %c0_1] : memref<1x16x48xf32, #tpu.memory_space<vmem>>, vector<1x16x48xf32>
    %1 = vector.shape_cast %0 : vector<1x16x48xf32> to vector<16x48xf32>
    %2 = arith.truncf %1 : vector<16x48xf32> to vector<16x48xbf16>
    %c0_2 = arith.constant 0 : index
    %c0_3 = arith.constant 0 : index
    %3 = vector.load %arg2[%c0_2, %c0_3] : memref<48x32xf32, #tpu.memory_space<vmem>>, vector<48x32xf32>
    %4 = arith.truncf %3 : vector<48x32xf32> to vector<48x32xbf16>
    %cst = arith.constant dense<0.000000e+00> : vector<16x32xf32>
    %5 = tpu.matmul %2, %4, %cst {dimension_numbers = #tpu.dot_dimension_numbers<[1], [0], [0], [1], [0, 0, 1, 1], [], []>} : vector<16x48xbf16>, vector<48x32xbf16>, vector<16x32xf32> -> vector<16x32xf32>
    %c0_4 = arith.constant 0 : index
    %c0_5 = arith.constant 0 : index
    %6 = vector.load %arg3[%c0_4, %c0_5] : memref<1x32xf32, #tpu.memory_space<vmem>>, vector<1x32xf32>
    %7 = vector.broadcast %6 : vector<1x32xf32> to vector<16x32xf32>
    %8 = arith.addf %5, %7 : vector<16x32xf32>
    %9 = arith.mulf %8, %8 : vector<16x32xf32>
    %cst_6 = arith.constant dense<0.000000e+00> : vector<16xf32>
    %10 = vector.multi_reduction <add>, %9, %cst_6 [1] : vector<16x32xf32> to vector<16xf32>
    %11 = vector.shape_cast %10 : vector<16xf32> to vector<16x1xf32>
    %cst_7 = arith.constant 1.000000e-24 : f32
    %12 = vector.broadcast %cst_7 : f32 to vector<16x1xf32>
    %13 = arith.maximumf %11, %12 : vector<16x1xf32>
    %14 = math.rsqrt %13 : vector<16x1xf32>
    %15 = vector.broadcast %14 : vector<16x1xf32> to vector<16x32xf32>
    %16 = arith.mulf %8, %15 : vector<16x32xf32>
    %17 = arith.truncf %16 : vector<16x32xf32> to vector<16x32xbf16>
    %c0_8 = arith.constant 0 : index
    %c0_9 = arith.constant 0 : index
    %18 = vector.load %arg5[%c0_8, %c0_9] : memref<1x32xf32, #tpu.memory_space<vmem>>, vector<1x32xf32>
    %c0_10 = arith.constant 0 : index
    %c0_11 = arith.constant 0 : index
    %19 = vector.load %arg6[%c0_10, %c0_11] : memref<1x32xf32, #tpu.memory_space<vmem>>, vector<1x32xf32>
    %c0_12 = arith.constant 0 : index
    %c0_13 = arith.constant 0 : index
    %20 = vector.load %arg7[%c0_12, %c0_13] : memref<32x32xf32, #tpu.memory_space<vmem>>, vector<32x32xf32>
    %21 = arith.truncf %20 : vector<32x32xf32> to vector<32x32xbf16>
    %c0_14 = arith.constant 0 : index
    %c0_15 = arith.constant 0 : index
    %c0_16 = arith.constant 0 : index
    %22 = vector.load %arg4[%c0_14, %c0_15, %c0_16] : memref<2x4x32xf32, #tpu.memory_space<vmem>>, vector<1x4x32xf32>
    %23 = vector.shape_cast %22 : vector<1x4x32xf32> to vector<4x32xf32>
    %cst_17 = arith.constant dense<0.000000e+00> : vector<4xf32>
    %24 = vector.multi_reduction <add>, %23, %cst_17 [1] : vector<4x32xf32> to vector<4xf32>
    %25 = vector.shape_cast %24 : vector<4xf32> to vector<4x1xf32>
    %cst_18 = arith.constant 3.200000e+01 : f32
    %26 = vector.broadcast %cst_18 : f32 to vector<4x1xf32>
    %27 = arith.divf %25, %26 : vector<4x1xf32>
    %28 = vector.broadcast %27 : vector<4x1xf32> to vector<4x32xf32>
    %29 = arith.subf %23, %28 : vector<4x32xf32>
    %30 = arith.mulf %29, %29 : vector<4x32xf32>
    %cst_19 = arith.constant dense<0.000000e+00> : vector<4xf32>
    %31 = vector.multi_reduction <add>, %30, %cst_19 [1] : vector<4x32xf32> to vector<4xf32>
    %32 = vector.shape_cast %31 : vector<4xf32> to vector<4x1xf32>
    %cst_20 = arith.constant 3.200000e+01 : f32
    %33 = vector.broadcast %cst_20 : f32 to vector<4x1xf32>
    %34 = arith.divf %32, %33 : vector<4x1xf32>
    %35 = vector.broadcast %27 : vector<4x1xf32> to vector<4x32xf32>
    %36 = arith.subf %23, %35 : vector<4x32xf32>
    %cst_21 = arith.constant 9.99999974E-6 : f32
    %37 = vector.broadcast %cst_21 : f32 to vector<4x1xf32>
    %38 = arith.addf %34, %37 : vector<4x1xf32>
    %39 = math.rsqrt %38 : vector<4x1xf32>
    %40 = vector.broadcast %39 : vector<4x1xf32> to vector<4x32xf32>
    %41 = arith.mulf %36, %40 : vector<4x32xf32>
    %42 = vector.broadcast %18 : vector<1x32xf32> to vector<4x32xf32>
    %43 = arith.mulf %41, %42 : vector<4x32xf32>
    %44 = vector.broadcast %19 : vector<1x32xf32> to vector<4x32xf32>
    %45 = arith.addf %43, %44 : vector<4x32xf32>
    %46 = arith.truncf %45 : vector<4x32xf32> to vector<4x32xbf16>
    %cst_22 = arith.constant dense<0.000000e+00> : vector<4x32xf32>
    %47 = tpu.matmul %46, %21, %cst_22 {dimension_numbers = #tpu.dot_dimension_numbers<[1], [0], [0], [1], [0, 0, 1, 1], [], []>} : vector<4x32xbf16>, vector<32x32xbf16>, vector<4x32xf32> -> vector<4x32xf32>
    %48 = arith.mulf %47, %47 : vector<4x32xf32>
    %cst_23 = arith.constant dense<0.000000e+00> : vector<4xf32>
    %49 = vector.multi_reduction <add>, %48, %cst_23 [1] : vector<4x32xf32> to vector<4xf32>
    %50 = vector.shape_cast %49 : vector<4xf32> to vector<4x1xf32>
    %cst_24 = arith.constant 1.000000e-24 : f32
    %51 = vector.broadcast %cst_24 : f32 to vector<4x1xf32>
    %52 = arith.maximumf %50, %51 : vector<4x1xf32>
    %53 = math.rsqrt %52 : vector<4x1xf32>
    %54 = vector.broadcast %53 : vector<4x1xf32> to vector<4x32xf32>
    %55 = arith.mulf %47, %54 : vector<4x32xf32>
    %56 = arith.truncf %55 : vector<4x32xf32> to vector<4x32xbf16>
    %cst_25 = arith.constant dense<0.000000e+00> : vector<4x16xf32>
    %57 = tpu.matmul %56, %17, %cst_25 {dimension_numbers = #tpu.dot_dimension_numbers<[1], [1], [0], [0], [0, 0, 1, 0], [], []>} : vector<4x32xbf16>, vector<16x32xbf16>, vector<4x16xf32> -> vector<4x16xf32>
    %c1 = arith.constant 1 : index
    %c0_26 = arith.constant 0 : index
    %c0_27 = arith.constant 0 : index
    %58 = vector.load %arg4[%c1, %c0_26, %c0_27] : memref<2x4x32xf32, #tpu.memory_space<vmem>>, vector<1x4x32xf32>
    %59 = vector.shape_cast %58 : vector<1x4x32xf32> to vector<4x32xf32>
    %cst_28 = arith.constant dense<0.000000e+00> : vector<4xf32>
    %60 = vector.multi_reduction <add>, %59, %cst_28 [1] : vector<4x32xf32> to vector<4xf32>
    %61 = vector.shape_cast %60 : vector<4xf32> to vector<4x1xf32>
    %cst_29 = arith.constant 3.200000e+01 : f32
    %62 = vector.broadcast %cst_29 : f32 to vector<4x1xf32>
    %63 = arith.divf %61, %62 : vector<4x1xf32>
    %64 = vector.broadcast %63 : vector<4x1xf32> to vector<4x32xf32>
    %65 = arith.subf %59, %64 : vector<4x32xf32>
    %66 = arith.mulf %65, %65 : vector<4x32xf32>
    %cst_30 = arith.constant dense<0.000000e+00> : vector<4xf32>
    %67 = vector.multi_reduction <add>, %66, %cst_30 [1] : vector<4x32xf32> to vector<4xf32>
    %68 = vector.shape_cast %67 : vector<4xf32> to vector<4x1xf32>
    %cst_31 = arith.constant 3.200000e+01 : f32
    %69 = vector.broadcast %cst_31 : f32 to vector<4x1xf32>
    %70 = arith.divf %68, %69 : vector<4x1xf32>
    %71 = vector.broadcast %63 : vector<4x1xf32> to vector<4x32xf32>
    %72 = arith.subf %59, %71 : vector<4x32xf32>
    %cst_32 = arith.constant 9.99999974E-6 : f32
    %73 = vector.broadcast %cst_32 : f32 to vector<4x1xf32>
    %74 = arith.addf %70, %73 : vector<4x1xf32>
    %75 = math.rsqrt %74 : vector<4x1xf32>
    %76 = vector.broadcast %75 : vector<4x1xf32> to vector<4x32xf32>
    %77 = arith.mulf %72, %76 : vector<4x32xf32>
    %78 = vector.broadcast %18 : vector<1x32xf32> to vector<4x32xf32>
    %79 = arith.mulf %77, %78 : vector<4x32xf32>
    %80 = vector.broadcast %19 : vector<1x32xf32> to vector<4x32xf32>
    %81 = arith.addf %79, %80 : vector<4x32xf32>
    %82 = arith.truncf %81 : vector<4x32xf32> to vector<4x32xbf16>
    %cst_33 = arith.constant dense<0.000000e+00> : vector<4x32xf32>
    %83 = tpu.matmul %82, %21, %cst_33 {dimension_numbers = #tpu.dot_dimension_numbers<[1], [0], [0], [1], [0, 0, 1, 1], [], []>} : vector<4x32xbf16>, vector<32x32xbf16>, vector<4x32xf32> -> vector<4x32xf32>
    %84 = arith.mulf %83, %83 : vector<4x32xf32>
    %cst_34 = arith.constant dense<0.000000e+00> : vector<4xf32>
    %85 = vector.multi_reduction <add>, %84, %cst_34 [1] : vector<4x32xf32> to vector<4xf32>
    %86 = vector.shape_cast %85 : vector<4xf32> to vector<4x1xf32>
    %cst_35 = arith.constant 1.000000e-24 : f32
    %87 = vector.broadcast %cst_35 : f32 to vector<4x1xf32>
    %88 = arith.maximumf %86, %87 : vector<4x1xf32>
    %89 = math.rsqrt %88 : vector<4x1xf32>
    %90 = vector.broadcast %89 : vector<4x1xf32> to vector<4x32xf32>
    %91 = arith.mulf %83, %90 : vector<4x32xf32>
    %92 = arith.truncf %91 : vector<4x32xf32> to vector<4x32xbf16>
    %cst_36 = arith.constant dense<0.000000e+00> : vector<4x16xf32>
    %93 = tpu.matmul %92, %17, %cst_36 {dimension_numbers = #tpu.dot_dimension_numbers<[1], [1], [0], [0], [0, 0, 1, 0], [], []>} : vector<4x32xbf16>, vector<16x32xbf16>, vector<4x16xf32> -> vector<4x16xf32>
    %94 = vector.shape_cast %57 : vector<4x16xf32> to vector<1x4x16xf32>
    %95 = vector.shape_cast %93 : vector<4x16xf32> to vector<1x4x16xf32>
    %96 = tpu.concatenate %94, %95 in 0 : vector<1x4x16xf32>, vector<1x4x16xf32> -> vector<2x4x16xf32>
    %cst_37 = arith.constant 1.000000e+00 : f32
    %97 = vector.broadcast %cst_37 : f32 to vector<2x4x16xf32>
    %98 = arith.subf %96, %97 : vector<2x4x16xf32>
    %cst_38 = arith.constant 1.000000e+01 : f32
    %99 = vector.broadcast %cst_38 : f32 to vector<2x4x16xf32>
    %100 = arith.mulf %98, %99 : vector<2x4x16xf32>
    %101 = math.exp %100 : vector<2x4x16xf32>
    %cst_39 = arith.constant 1.000000e+00 : f32
    %102 = vector.broadcast %cst_39 : f32 to vector<4x16xf32>
    %cst_40 = arith.constant 1.000000e+00 : f32
    %103 = vector.broadcast %cst_40 : f32 to vector<2x4x1xf32>
    %c0_i32 = arith.constant 0 : i32
    %cst_41 = arith.constant 1.000000e+30 : f32
    %104:4 = scf.while (%arg10 = %c0_i32, %arg11 = %cst_41, %arg12 = %102, %arg13 = %103) : (i32, f32, vector<4x16xf32>, vector<2x4x1xf32>) -> (i32, f32, vector<4x16xf32>, vector<2x4x1xf32>) {
      %c10_i32 = arith.constant 10 : i32
      %120 = arith.cmpi slt, %arg10, %c10_i32 : i32
      %cst_49 = arith.constant 0.00999999977 : f32
      %121 = arith.cmpf oge, %arg11, %cst_49 : f32
      %122 = arith.andi %120, %121 : i1
      scf.condition(%122) %arg10, %arg11, %arg12, %arg13 : i32, f32, vector<4x16xf32>, vector<2x4x1xf32>
    } do {
    ^bb0(%arg10: i32, %arg11: f32, %arg12: vector<4x16xf32>, %arg13: vector<2x4x1xf32>):
      %120 = vector.broadcast %arg13 : vector<2x4x1xf32> to vector<2x4x16xf32>
      %121 = arith.mulf %101, %120 : vector<2x4x16xf32>
      %cst_49 = arith.constant dense<0.000000e+00> : vector<4x16xf32>
      %122 = vector.multi_reduction <add>, %121, %cst_49 [0] : vector<2x4x16xf32> to vector<4x16xf32>
      %cst_50 = arith.constant 6.250000e-02 : f32
      %123 = vector.broadcast %cst_50 : f32 to vector<4x16xf32>
      %124 = arith.divf %123, %122 : vector<4x16xf32>
      %125 = vector.shape_cast %124 : vector<4x16xf32> to vector<1x4x16xf32>
      %126 = vector.broadcast %125 : vector<1x4x16xf32> to vector<2x4x16xf32>
      %127 = arith.mulf %101, %126 : vector<2x4x16xf32>
      %cst_51 = arith.constant dense<0.000000e+00> : vector<2x4xf32>
      %128 = vector.multi_reduction <add>, %127, %cst_51 [2] : vector<2x4x16xf32> to vector<2x4xf32>
      %129 = vector.shape_cast %128 : vector<2x4xf32> to vector<2x4x1xf32>
      %130 = tpu.reciprocal %129 {approx = true} : vector<2x4x1xf32> -> vector<2x4x1xf32>
      %cst_52 = arith.constant 5.000000e-01 : f32
      %131 = vector.broadcast %cst_52 : f32 to vector<2x4x1xf32>
      %132 = arith.mulf %131, %130 : vector<2x4x1xf32>
      %133 = vector.broadcast %132 : vector<2x4x1xf32> to vector<2x4x16xf32>
      %134 = arith.mulf %101, %133 : vector<2x4x16xf32>
      %cst_53 = arith.constant dense<0.000000e+00> : vector<4x16xf32>
      %135 = vector.multi_reduction <add>, %134, %cst_53 [0] : vector<2x4x16xf32> to vector<4x16xf32>
      %cst_54 = arith.constant 6.250000e-02 : f32
      %136 = vector.broadcast %cst_54 : f32 to vector<4x16xf32>
      %137 = arith.divf %136, %135 : vector<4x16xf32>
      %138 = vector.shape_cast %137 : vector<4x16xf32> to vector<1x4x16xf32>
      %139 = vector.broadcast %138 : vector<1x4x16xf32> to vector<2x4x16xf32>
      %140 = arith.mulf %101, %139 : vector<2x4x16xf32>
      %cst_55 = arith.constant dense<0.000000e+00> : vector<2x4xf32>
      %141 = vector.multi_reduction <add>, %140, %cst_55 [2] : vector<2x4x16xf32> to vector<2x4xf32>
      %142 = vector.shape_cast %141 : vector<2x4xf32> to vector<2x4x1xf32>
      %143 = tpu.reciprocal %142 {approx = true} : vector<2x4x1xf32> -> vector<2x4x1xf32>
      %cst_56 = arith.constant 5.000000e-01 : f32
      %144 = vector.broadcast %cst_56 : f32 to vector<2x4x1xf32>
      %145 = arith.mulf %144, %143 : vector<2x4x1xf32>
      %146 = vector.broadcast %145 : vector<2x4x1xf32> to vector<2x4x16xf32>
      %147 = arith.mulf %101, %146 : vector<2x4x16xf32>
      %cst_57 = arith.constant dense<0.000000e+00> : vector<4x16xf32>
      %148 = vector.multi_reduction <add>, %147, %cst_57 [0] : vector<2x4x16xf32> to vector<4x16xf32>
      %cst_58 = arith.constant 6.250000e-02 : f32
      %149 = vector.broadcast %cst_58 : f32 to vector<4x16xf32>
      %150 = arith.divf %149, %148 : vector<4x16xf32>
      %151 = vector.shape_cast %150 : vector<4x16xf32> to vector<1x4x16xf32>
      %152 = vector.broadcast %151 : vector<1x4x16xf32> to vector<2x4x16xf32>
      %153 = arith.mulf %101, %152 : vector<2x4x16xf32>
      %cst_59 = arith.constant dense<0.000000e+00> : vector<2x4xf32>
      %154 = vector.multi_reduction <add>, %153, %cst_59 [2] : vector<2x4x16xf32> to vector<2x4xf32>
      %155 = vector.shape_cast %154 : vector<2x4xf32> to vector<2x4x1xf32>
      %156 = tpu.reciprocal %155 {approx = true} : vector<2x4x1xf32> -> vector<2x4x1xf32>
      %cst_60 = arith.constant 5.000000e-01 : f32
      %157 = vector.broadcast %cst_60 : f32 to vector<2x4x1xf32>
      %158 = arith.mulf %157, %156 : vector<2x4x1xf32>
      %159 = vector.broadcast %158 : vector<2x4x1xf32> to vector<2x4x16xf32>
      %160 = arith.mulf %101, %159 : vector<2x4x16xf32>
      %cst_61 = arith.constant dense<0.000000e+00> : vector<4x16xf32>
      %161 = vector.multi_reduction <add>, %160, %cst_61 [0] : vector<2x4x16xf32> to vector<4x16xf32>
      %cst_62 = arith.constant 6.250000e-02 : f32
      %162 = vector.broadcast %cst_62 : f32 to vector<4x16xf32>
      %163 = arith.divf %162, %161 : vector<4x16xf32>
      %164 = vector.shape_cast %163 : vector<4x16xf32> to vector<1x4x16xf32>
      %165 = vector.broadcast %164 : vector<1x4x16xf32> to vector<2x4x16xf32>
      %166 = arith.mulf %101, %165 : vector<2x4x16xf32>
      %cst_63 = arith.constant dense<0.000000e+00> : vector<2x4xf32>
      %167 = vector.multi_reduction <add>, %166, %cst_63 [2] : vector<2x4x16xf32> to vector<2x4xf32>
      %168 = vector.shape_cast %167 : vector<2x4xf32> to vector<2x4x1xf32>
      %169 = tpu.reciprocal %168 {approx = true} : vector<2x4x1xf32> -> vector<2x4x1xf32>
      %cst_64 = arith.constant 5.000000e-01 : f32
      %170 = vector.broadcast %cst_64 : f32 to vector<2x4x1xf32>
      %171 = arith.mulf %170, %169 : vector<2x4x1xf32>
      %172 = vector.broadcast %171 : vector<2x4x1xf32> to vector<2x4x16xf32>
      %173 = arith.mulf %101, %172 : vector<2x4x16xf32>
      %cst_65 = arith.constant dense<0.000000e+00> : vector<4x16xf32>
      %174 = vector.multi_reduction <add>, %173, %cst_65 [0] : vector<2x4x16xf32> to vector<4x16xf32>
      %cst_66 = arith.constant 6.250000e-02 : f32
      %175 = vector.broadcast %cst_66 : f32 to vector<4x16xf32>
      %176 = arith.divf %175, %174 : vector<4x16xf32>
      %177 = vector.shape_cast %176 : vector<4x16xf32> to vector<1x4x16xf32>
      %178 = vector.broadcast %177 : vector<1x4x16xf32> to vector<2x4x16xf32>
      %179 = arith.mulf %101, %178 : vector<2x4x16xf32>
      %cst_67 = arith.constant dense<0.000000e+00> : vector<2x4xf32>
      %180 = vector.multi_reduction <add>, %179, %cst_67 [2] : vector<2x4x16xf32> to vector<2x4xf32>
      %181 = vector.shape_cast %180 : vector<2x4xf32> to vector<2x4x1xf32>
      %182 = tpu.reciprocal %181 {approx = true} : vector<2x4x1xf32> -> vector<2x4x1xf32>
      %cst_68 = arith.constant 5.000000e-01 : f32
      %183 = vector.broadcast %cst_68 : f32 to vector<2x4x1xf32>
      %184 = arith.mulf %183, %182 : vector<2x4x1xf32>
      %185 = vector.broadcast %184 : vector<2x4x1xf32> to vector<2x4x16xf32>
      %186 = arith.mulf %101, %185 : vector<2x4x16xf32>
      %cst_69 = arith.constant dense<0.000000e+00> : vector<4x16xf32>
      %187 = vector.multi_reduction <add>, %186, %cst_69 [0] : vector<2x4x16xf32> to vector<4x16xf32>
      %cst_70 = arith.constant 6.250000e-02 : f32
      %188 = vector.broadcast %cst_70 : f32 to vector<4x16xf32>
      %189 = arith.divf %188, %187 : vector<4x16xf32>
      %190 = vector.shape_cast %189 : vector<4x16xf32> to vector<1x4x16xf32>
      %191 = vector.broadcast %190 : vector<1x4x16xf32> to vector<2x4x16xf32>
      %192 = arith.mulf %101, %191 : vector<2x4x16xf32>
      %cst_71 = arith.constant dense<0.000000e+00> : vector<2x4xf32>
      %193 = vector.multi_reduction <add>, %192, %cst_71 [2] : vector<2x4x16xf32> to vector<2x4xf32>
      %194 = vector.shape_cast %193 : vector<2x4xf32> to vector<2x4x1xf32>
      %195 = tpu.reciprocal %194 {approx = true} : vector<2x4x1xf32> -> vector<2x4x1xf32>
      %cst_72 = arith.constant 5.000000e-01 : f32
      %196 = vector.broadcast %cst_72 : f32 to vector<2x4x1xf32>
      %197 = arith.mulf %196, %195 : vector<2x4x1xf32>
      %198 = vector.broadcast %197 : vector<2x4x1xf32> to vector<2x4x16xf32>
      %199 = arith.mulf %101, %198 : vector<2x4x16xf32>
      %cst_73 = arith.constant dense<0.000000e+00> : vector<4x16xf32>
      %200 = vector.multi_reduction <add>, %199, %cst_73 [0] : vector<2x4x16xf32> to vector<4x16xf32>
      %cst_74 = arith.constant 6.250000e-02 : f32
      %201 = vector.broadcast %cst_74 : f32 to vector<4x16xf32>
      %202 = arith.divf %201, %200 : vector<4x16xf32>
      %203 = vector.shape_cast %202 : vector<4x16xf32> to vector<1x4x16xf32>
      %204 = vector.broadcast %203 : vector<1x4x16xf32> to vector<2x4x16xf32>
      %205 = arith.mulf %101, %204 : vector<2x4x16xf32>
      %cst_75 = arith.constant dense<0.000000e+00> : vector<2x4xf32>
      %206 = vector.multi_reduction <add>, %205, %cst_75 [2] : vector<2x4x16xf32> to vector<2x4xf32>
      %207 = vector.shape_cast %206 : vector<2x4xf32> to vector<2x4x1xf32>
      %208 = tpu.reciprocal %207 {approx = true} : vector<2x4x1xf32> -> vector<2x4x1xf32>
      %cst_76 = arith.constant 5.000000e-01 : f32
      %209 = vector.broadcast %cst_76 : f32 to vector<2x4x1xf32>
      %210 = arith.mulf %209, %208 : vector<2x4x1xf32>
      %211 = vector.broadcast %210 : vector<2x4x1xf32> to vector<2x4x16xf32>
      %212 = arith.mulf %101, %211 : vector<2x4x16xf32>
      %cst_77 = arith.constant dense<0.000000e+00> : vector<4x16xf32>
      %213 = vector.multi_reduction <add>, %212, %cst_77 [0] : vector<2x4x16xf32> to vector<4x16xf32>
      %cst_78 = arith.constant 6.250000e-02 : f32
      %214 = vector.broadcast %cst_78 : f32 to vector<4x16xf32>
      %215 = arith.divf %214, %213 : vector<4x16xf32>
      %216 = vector.shape_cast %215 : vector<4x16xf32> to vector<1x4x16xf32>
      %217 = vector.broadcast %216 : vector<1x4x16xf32> to vector<2x4x16xf32>
      %218 = arith.mulf %101, %217 : vector<2x4x16xf32>
      %cst_79 = arith.constant dense<0.000000e+00> : vector<2x4xf32>
      %219 = vector.multi_reduction <add>, %218, %cst_79 [2] : vector<2x4x16xf32> to vector<2x4xf32>
      %220 = vector.shape_cast %219 : vector<2x4xf32> to vector<2x4x1xf32>
      %221 = tpu.reciprocal %220 {approx = true} : vector<2x4x1xf32> -> vector<2x4x1xf32>
      %cst_80 = arith.constant 5.000000e-01 : f32
      %222 = vector.broadcast %cst_80 : f32 to vector<2x4x1xf32>
      %223 = arith.mulf %222, %221 : vector<2x4x1xf32>
      %224 = vector.broadcast %223 : vector<2x4x1xf32> to vector<2x4x16xf32>
      %225 = arith.mulf %101, %224 : vector<2x4x16xf32>
      %cst_81 = arith.constant dense<0.000000e+00> : vector<4x16xf32>
      %226 = vector.multi_reduction <add>, %225, %cst_81 [0] : vector<2x4x16xf32> to vector<4x16xf32>
      %cst_82 = arith.constant 6.250000e-02 : f32
      %227 = vector.broadcast %cst_82 : f32 to vector<4x16xf32>
      %228 = arith.divf %227, %226 : vector<4x16xf32>
      %229 = vector.shape_cast %228 : vector<4x16xf32> to vector<1x4x16xf32>
      %230 = vector.broadcast %229 : vector<1x4x16xf32> to vector<2x4x16xf32>
      %231 = arith.mulf %101, %230 : vector<2x4x16xf32>
      %cst_83 = arith.constant dense<0.000000e+00> : vector<2x4xf32>
      %232 = vector.multi_reduction <add>, %231, %cst_83 [2] : vector<2x4x16xf32> to vector<2x4xf32>
      %233 = vector.shape_cast %232 : vector<2x4xf32> to vector<2x4x1xf32>
      %234 = tpu.reciprocal %233 {approx = true} : vector<2x4x1xf32> -> vector<2x4x1xf32>
      %cst_84 = arith.constant 5.000000e-01 : f32
      %235 = vector.broadcast %cst_84 : f32 to vector<2x4x1xf32>
      %236 = arith.mulf %235, %234 : vector<2x4x1xf32>
      %237 = vector.broadcast %236 : vector<2x4x1xf32> to vector<2x4x16xf32>
      %238 = arith.mulf %101, %237 : vector<2x4x16xf32>
      %cst_85 = arith.constant dense<0.000000e+00> : vector<4x16xf32>
      %239 = vector.multi_reduction <add>, %238, %cst_85 [0] : vector<2x4x16xf32> to vector<4x16xf32>
      %cst_86 = arith.constant 6.250000e-02 : f32
      %240 = vector.broadcast %cst_86 : f32 to vector<4x16xf32>
      %241 = arith.divf %240, %239 : vector<4x16xf32>
      %242 = vector.shape_cast %241 : vector<4x16xf32> to vector<1x4x16xf32>
      %243 = vector.broadcast %242 : vector<1x4x16xf32> to vector<2x4x16xf32>
      %244 = arith.mulf %101, %243 : vector<2x4x16xf32>
      %cst_87 = arith.constant dense<0.000000e+00> : vector<2x4xf32>
      %245 = vector.multi_reduction <add>, %244, %cst_87 [2] : vector<2x4x16xf32> to vector<2x4xf32>
      %246 = vector.shape_cast %245 : vector<2x4xf32> to vector<2x4x1xf32>
      %247 = tpu.reciprocal %246 {approx = true} : vector<2x4x1xf32> -> vector<2x4x1xf32>
      %cst_88 = arith.constant 5.000000e-01 : f32
      %248 = vector.broadcast %cst_88 : f32 to vector<2x4x1xf32>
      %249 = arith.mulf %248, %247 : vector<2x4x1xf32>
      %250 = arith.subf %241, %arg12 : vector<4x16xf32>
      %251 = math.absf %250 : vector<4x16xf32>
      %252 = vector.shape_cast %251 : vector<4x16xf32> to vector<1x4x16xf32>
      %cst_89 = arith.constant dense<0.000000e+00> : vector<1xf32>
      %253 = vector.multi_reduction <add>, %252, %cst_89 [1, 2] : vector<1x4x16xf32> to vector<1xf32>
      %254 = vector.shape_cast %253 : vector<1xf32> to vector<1x1x1xf32>
      %255 = vector.extract %254[0, 0, 0] : f32 from vector<1x1x1xf32>
      %cst_90 = arith.constant 6.400000e+01 : f32
      %256 = arith.divf %255, %cst_90 : f32
      %c1_i32 = arith.constant 1 : i32
      %257 = arith.addi %arg10, %c1_i32 : i32
      scf.yield %257, %256, %241, %249 : i32, f32, vector<4x16xf32>, vector<2x4x1xf32>
    }
    %105 = vector.shape_cast %104#2 : vector<4x16xf32> to vector<1x4x16xf32>
    %106 = vector.broadcast %105 : vector<1x4x16xf32> to vector<2x4x16xf32>
    %107 = arith.mulf %106, %101 : vector<2x4x16xf32>
    %108 = arith.mulf %107, %96 : vector<2x4x16xf32>
    %cst_42 = arith.constant dense<0.000000e+00> : vector<2x4xf32>
    %109 = vector.multi_reduction <add>, %108, %cst_42 [2] : vector<2x4x16xf32> to vector<2x4xf32>
    %110 = vector.shape_cast %109 : vector<2x4xf32> to vector<2x4x1xf32>
    %111 = arith.mulf %104#3, %110 : vector<2x4x1xf32>
    %cst_43 = arith.constant dense<0.000000e+00> : vector<4x1xf32>
    %112 = vector.multi_reduction <add>, %111, %cst_43 [0] : vector<2x4x1xf32> to vector<4x1xf32>
    %c0_44 = arith.constant 0 : index
    %c0_45 = arith.constant 0 : index
    %113 = memref.load %arg8[%c0_44, %c0_45] : memref<1x1xf32, #tpu.memory_space<smem>>
    %114 = vector.broadcast %113 : f32 to vector<1x1xf32>
    %115 = math.exp %114 : vector<1x1xf32>
    %116 = vector.broadcast %115 : vector<1x1xf32> to vector<4x1xf32>
    %117 = arith.mulf %112, %116 : vector<4x1xf32>
    %118 = vector.shape_cast %117 : vector<4x1xf32> to vector<1x4x1xf32>
    %c0_46 = arith.constant 0 : index
    %c0_47 = arith.constant 0 : index
    %c0_48 = arith.constant 0 : index
    %119 = vector.load %arg9[%c0_46, %c0_47, %c0_48] : memref<1x4x1xf32, #tpu.memory_space<vmem>>, vector<1x4x1xf32>
    tpu.vector_store %arg9[%c0_46, %c0_47, %c0_48], %118 {strides = array<i32>} : memref<1x4x1xf32, #tpu.memory_space<vmem>>, vector<1x4x1xf32>,
    return
  }
  func.func @transform_0(%arg0: i32) -> (i32, i32, i32) {
    %c0_i32 = arith.constant 0 : i32
    %c0_i32_0 = arith.constant 0 : i32
    %c0_i32_1 = arith.constant 0 : i32
    return %arg0, %c0_i32, %c0_i32_0 : i32, i32, i32
  }
  func.func @transform_1(%arg0: i32) -> (i32, i32) {
    %c0_i32 = arith.constant 0 : i32
    %c0_i32_0 = arith.constant 0 : i32
    %c0_i32_1 = arith.constant 0 : i32
    return %c0_i32, %c0_i32_0 : i32, i32
  }
  func.func @transform_2(%arg0: i32) -> (i32, i32) {
    %c0_i32 = arith.constant 0 : i32
    %c0_i32_0 = arith.constant 0 : i32
    %c0_i32_1 = arith.constant 0 : i32
    return %c0_i32, %c0_i32_0 : i32, i32
  }
  func.func @transform_3(%arg0: i32) -> (i32, i32, i32) {
    %c0_i32 = arith.constant 0 : i32
    %c0_i32_0 = arith.constant 0 : i32
    %c0_i32_1 = arith.constant 0 : i32
    %c0_i32_2 = arith.constant 0 : i32
    return %c0_i32, %c0_i32_0, %c0_i32_1 : i32, i32, i32
  }
  func.func @transform_4(%arg0: i32) -> (i32, i32) {
    %c0_i32 = arith.constant 0 : i32
    %c0_i32_0 = arith.constant 0 : i32
    %c0_i32_1 = arith.constant 0 : i32
    return %c0_i32, %c0_i32_0 : i32, i32
  }
  func.func @transform_5(%arg0: i32) -> (i32, i32) {
    %c0_i32 = arith.constant 0 : i32
    %c0_i32_0 = arith.constant 0 : i32
    %c0_i32_1 = arith.constant 0 : i32
    return %c0_i32, %c0_i32_0 : i32, i32
  }
  func.func @transform_6(%arg0: i32) -> (i32, i32) {
    %c0_i32 = arith.constant 0 : i32
    %c0_i32_0 = arith.constant 0 : i32
    %c0_i32_1 = arith.constant 0 : i32
    return %c0_i32, %c0_i32_0 : i32, i32
  }
  func.func @transform_7(%arg0: i32) -> (i32, i32) {
    %c0_i32 = arith.constant 0 : i32
    %c0_i32_0 = arith.constant 0 : i32
    %c0_i32_1 = arith.constant 0 : i32
    return %c0_i32, %c0_i32_0 : i32, i32
  }
  func.func @transform_8(%arg0: i32) -> (i32, i32, i32) {
    %c0_i32 = arith.constant 0 : i32
    %c0_i32_0 = arith.constant 0 : i32
    %c0_i32_1 = arith.constant 0 : i32
    return %arg0, %c0_i32, %c0_i32_0 : i32, i32, i32
  }
}

</mosaic_0001>

<bundles_post_ra>
// kernel: custom_clip_forward.1
= control target key start
LH: loop header
LB: loop body
LE: loop exit
PB: predicated region body
PF: predicated region fallthrough
CT: control target
= control target key end

     0   :  { %s1241_s29 = smov 0   ;;  %s1459_s0 = inlined_call_operand.vmem [shape: f32[2,16,48], index: 0, kind: input, shape index: {}]   ;;  %s1460_s1 = inlined_call_operand.vmem [shape: f32[48,32], index: 1, kind: input, shape index: {}]   ;;  %s1461_s2 = inlined_call_operand.vmem [shape: f32[1,32], index: 2, kind: input, shape index: {}]   ;;  %s1462_s3 = inlined_call_operand.vmem [shape: f32[2,4,32], index: 3, kind: input, shape index: {}]   ;;  %s1463_s4 = inlined_call_operand.vmem [shape: f32[1,32], index: 4, kind: input, shape index: {}]   ;;  %s1464_s5 = inlined_call_operand.vmem [shape: f32[1,32], index: 5, kind: input, shape index: {}]   ;;  %s1465_s6 = inlined_call_operand.vmem [shape: f32[32,32], index: 6, kind: input, shape index: {}]   ;;  %s1466_s7 = inlined_call_operand.<no memory space> [shape: f32[1,1], index: 7, kind: input, shape index: {}]   ;;  %s1467_s8 = inlined_call_operand.vmem [shape: f32[2,4,1], index: 8, kind: output, shape index: {}]  }
   0x1   :  { %13 = sst [smem:[#allocation2]] %s1466_s7 }
   0x2 LB: > { %s955_s30 = sadd.s32 4294967295, %s1173_s29   ;;  %p959_p0 = scmp.ge.s32.totalorder %s1173_s29, 1  ;;  %s1173_s29 = sphi %s1241_s29, %s19_s29  }
   0x3   : > { %p263_p1 = scmp.lt.s32.totalorder %s1173_s29, 3 }
   0x5   : > { %p264_p2 = pnand %p959_p0, %p263_p1 }
   0x6   : > { %p296_p3 = scmp.lt.s32.totalorder (!%p264_p2), %s955_s30, 1 }
   0x7   : > { %267 = sbr.rel (%p264_p2) target bundleno = 2899 (0xb53), region = 52 }
   0xc   : > { %v394_v0 = vld [vmem:[%s1462_s3] sm:$0xf]  ;;  %vm395_vm0 = vcmask 257024   ;;  %v969_v1 = vld [vmem:[%s1462_s3 + $0x4] sm:$0xf]  ;;  %v1191_v3 = vmov 0.0  }
   0xd   : > { %v396_v2 = vsel %vm395_vm0, %v394_v0, 0.0  ;;  %991 = vmatprep.subr.bf16.mxu0 %v1191_v3  ;;  %v313_v4 = vld [vmem:[%s1460_s1 + $0x20] sm:$0xff]  ;;  %v314_v5 = vld [vmem:[%s1460_s1 + $0x28] sm:$0xff]  ;;  %v311_v6 = vld [vmem:[%s1460_s1 + $0x10] sm:$0xff]  ;;  %1001 = vmatprep.subr.bf16.mxu1 %v1191_v3  ;;  %vm1192_vm1 = vmmov 0   ;;  %v524_v9 = vsel %vm395_vm0, %v969_v1, 0.0 }
   0xe   : > { %397 = vadd.xlane.f32.xlu0 %v396_v2  ;;  %v317_v7 = vpack.c.bf16 %v314_v5, %v313_v4  ;;  %v312_v8 = vld [vmem:[%s1460_s1 + $0x18] sm:$0xff]  ;;  %997 = vmatprep.mubr.msk.bf16.mxu0 %vm1192_vm1, %v1191_v3  ;;  %s1472_s30 = smov (!%p296_p3, %s955_s30), 1  ;;  %v309_v11 = vld [vmem:[%s1460_s1] sm:$0xff]  ;;  %v310_v12 = vld [vmem:[%s1460_s1 + $0x8] sm:$0xff]  ;;  %vm325_vm2 = vcmask 392192   ;;  %vm372_vm3 = vcmask 261120  }
   0xf   : > { %1005 = vmatprep.mubr.msk.bf16.mxu1 %vm1192_vm1, %v1191_v3  ;;  %v316_v10 = vpack.c.bf16 %v312_v8, %v311_v6  ;;  %s976_s24 = sshll.u32 %s1472_s30, 4  ;;  %s962_s25 = sshll.u32 %s1472_s30, 2  ;;  %v315_v13 = vpack.c.bf16 %v310_v12, %v309_v11  ;;  %v390_v27 = vld [vmem:[%s1465_s6 + $0x10] sm:$0xff]  ;;  %v391_v28 = vld [vmem:[%s1465_s6 + $0x18] sm:$0xff]  ;;  %v388_v29 = vld [vmem:[%s1465_s6] sm:$0xff] }
  0x10   : > { %992 = vmatpush3.bf16.msra.mxu0 %v317_v7  ;;  %s300_s28 = scalar_lea.vmem %s1459_s0, %s976_s24  ;;  %s1288_s7 = scalar_lea.vmem %s1467_s8, %s962_s25  ;;  %v393_v30 = vpack.c.bf16 %v391_v28, %v390_v27  ;;  %v389_v31 = vld [vmem:[%s1465_s6 + $0x8] sm:$0xff]  ;;  %v963_v33 = vld [vmem:[%s1461_s2] ss:$0 sm:$0xff] }
  0x11   : > { %993 = vmatprep.subr.bf16.mxu0 %v1191_v3  ;;  %v306_v14 = vld [vmem:[%s300_s28] sm:$0xff]  ;;  %v307_v15 = vld [vmem:[%s300_s28 + $0x8] sm:$0xff]  ;;  %v392_v32 = vpack.c.bf16 %v389_v31, %v388_v29  ;;  %s1350_s24 = smov 0  }
  0x12   : > { %525 = vadd.xlane.f32.xlu0 %v524_v9  ;;  %v308_v16 = vpack.c.bf16 %v307_v15, %v306_v14  ;;  %1002 = vmatpush3.bf16.msra.mxu1 %v393_v30  ;;  %v965_v51 = vld [vmem:[%s1463_s4] ss:$0 sm:$0xff] }
  0x13   : > { %1003 = vmatprep.subr.bf16.mxu1 %v1191_v3  ;;  %v966_v53 = vld [vmem:[%s1464_s5] ss:$0 sm:$0xff] }
  0x14   : > { %994 = vmatpush3.bf16.msra.mxu0 %v316_v10 }
  0x15   : > { %995 = vmatprep.subr.bf16.mxu0 %v1191_v3 }
  0x16   : > { %1004 = vmatpush3.bf16.msra.mxu1 %v392_v32 }
  0x17   : > { %1009 = vmatprep.subr.bf16.mxu1 %v1191_v3 }
  0x18   : > { %996 = vmatpush3.bf16.msra.mxu0 %v315_v13 }
  0x19   : > { %1015 = vmatprep.subr.bf16.mxu0 %v1191_v3 }
  0x1b   : > { %998 = vmatmul.mubr.msk.bf16.vlgmr.msra.gmra.mxu0 %vm325_vm2, %v308_v16 }
  0x1c   : > { %1019 = vmatprep.mubr.msk.bf16.mxu0 %vm1192_vm1, %v1191_v3  ;;  %1016 = vmatpush3.bf16.msra.mxu0 %v393_v30 }
  0x1d   : > { %1017 = vmatprep.subr.bf16.mxu0 %v1191_v3 }
  0x20   : > { %1018 = vmatpush3.bf16.msra.mxu0 %v392_v32 }
  0x97   : > { %v398_v17 = vpop.xlane.xlu0 %397 }
  0x98   : > { %v400_v18 = vmul.f32 0.03125, %v398_v17 }
  0x9a   : > { %v401_v19 = vsub.f32 %v394_v0, %v400_v18 }
  0x9b   : > { %v526_v20 = vpop.xlane.xlu0 %525 }
  0x9c   : > { %v527_v21 = vmul.f32 0.03125, %v526_v20  ;;  %v402_v22 = vmul.f32 %v401_v19, %v401_v19 }
  0x9e   : > { %v528_v23 = vsub.f32 %v969_v1, %v527_v21  ;;  %v403_v24 = vsel %vm395_vm0, %v402_v22, 0.0 }
  0x9f   : > { %404 = vadd.xlane.f32.xlu1 %v403_v24 }
  0xa0   : > { %v529_v25 = vmul.f32 %v528_v23, %v528_v23 }
  0xa2   : > { %v530_v26 = vsel %vm395_vm0, %v529_v25, 0.0 }
  0xa3   : > { %531 = vadd.xlane.f32.xlu1 %v530_v26 }
  0xdb   : > { %v363_v34 = vpop.f32.mrf.mxu0 }
  0xdc   : > { %v364_v35 = vadd.f32 %v963_v33, %v363_v34 }
  0xdd   : > { %v999_v36 = vpop.f32.mrf.mxu0 }
  0xde   : > { %v370_v37 = vmul.f32 %v364_v35, %v364_v35 }
  0xdf   : > { %v366_v38 = vpop.f32.mrf.mxu0 }
  0xe0   : > { %v367_v39 = vadd.f32 %v963_v33, %v366_v38  ;;  %v373_v40 = vsel %vm372_vm3, %v370_v37, 0.0 }
  0xe1   : > { %374 = vadd.xlane.f32.xlu0 %v373_v40  ;;  %v1000_v41 = vpop.f32.mrf.mxu0 }
  0xe2   : > { %v371_v42 = vmul.f32 %v367_v39, %v367_v39 }
  0xe4   : > { %v376_v43 = vsel %vm372_vm3, %v371_v42, 0.0 }
  0xe5   : > { %377 = vadd.xlane.f32.xlu1 %v376_v43 }
 0x128   : > { %v405_v44 = vpop.xlane.xlu1 %404 }
 0x129   : > { %v406_v45 = vmul.f32 0.03125, %v405_v44 }
 0x12b   : > { %v407_v46 = vadd.f32 1e-05, %v406_v45 }
 0x12c   : > { %v532_v47 = vpop.xlane.xlu1 %531 }
 0x12d   : > { %1073 = vrsqrt.f32 %v407_v46  ;;  %v533_v48 = vmul.f32 0.03125, %v532_v47  ;;  %v1344_v46 = vmov 1.0   ;;  %v1346_v47 = vmov 1.0  }
 0x12f   : > { %v534_v49 = vadd.f32 1e-05, %v533_v48  ;;  %v1348_v48 = vmov 1.0  }
 0x131   : > { %1075 = vrsqrt.f32 %v534_v49 }
 0x13a   : > { %v1074_v50 = vpop.eup %1073 }
 0x13b   : > { %v409_v52 = vmul.f32 %v1074_v50, %v401_v19 }
 0x13d   : > { %v416_v54 = vmul.f32 %v965_v51, %v409_v52 }
 0x13e   : > { %v1076_v55 = vpop.eup %1075 }
 0x13f   : > { %v423_v56 = vadd.f32 %v966_v53, %v416_v54  ;;  %v536_v57 = vmul.f32 %v1076_v55, %v528_v23 }
 0x141   : > { %v424_v58 = vpack.c.bf16 %v423_v56, %v423_v56  ;;  %v537_v59 = vmul.f32 %v965_v51, %v536_v57 }
 0x143   : > { %1006 = vmatmul.mubr.msk.bf16.vlgmr.msra.gmra.mxu1 %vm372_vm3, %v424_v58  ;;  %v538_v60 = vadd.f32 %v966_v53, %v537_v59 }
 0x144   : > { %1011 = vmatprep.mubr.msk.bf16.mxu1 %vm1192_vm1, %v1191_v3 }
 0x145   : > { %v539_v61 = vpack.c.bf16 %v538_v60, %v538_v60 }
 0x147   : > { %1020 = vmatmul.mubr.msk.bf16.vlgmr.msra.gmra.mxu0 %vm372_vm3, %v539_v61 }
 0x16a   : > { %v375_v62 = vpop.xlane.xlu0 %374 }
 0x16b   : > { %v379_v63 = vmax.f32 %v375_v62, 1e-24 }
 0x16d   : > { %1077 = vrsqrt.f32 %v379_v63 }
 0x16e   : > { %v378_v0 = vpop.xlane.xlu1 %377 }
 0x16f   : > { %v380_v1 = vmax.f32 %v378_v0, 1e-24 }
 0x171   : > { %1079 = vrsqrt.f32 %v380_v1 }
 0x17a   : > { %v1078_v2 = vpop.eup %1077 }
 0x17b   : > { %v383_v4 = vmul.f32 %v1078_v2, %v364_v35 }
 0x17e   : > { %v1080_v5 = vpop.eup %1079 }
 0x17f   : > { %v384_v6 = vmul.f32 %v1080_v5, %v367_v39 }
 0x181   : > { %v385_v7 = vpack.c.bf16 %v384_v6, %v383_v4 }
 0x183   : > { %v480_v8 = vsel %vm372_vm3, %v385_v7, 0 }
 0x184   : > { %1010 = vmatpush3.bf16.xpose.msra.mxu1 %v480_v8 }
 0x185   : > { %1023 = vmatprep.subr.bf16.mxu1 %v1191_v3 }
 0x203   : > { %v462_v9 = vpop.f32.mrf.mxu1 }
 0x204   : > { %v468_v10 = vmul.f32 %v462_v9, %v462_v9 }
 0x205   : > { %v1007_v11 = vpop.f32.mrf.mxu1 }
 0x206   : > { %v469_v12 = vsel %vm395_vm0, %v468_v10, 0.0 }
 0x207   : > { %v465_v13 = vpop.f32.mrf.mxu1  ;;  %470 = vadd.xlane.f32.xlu0 %v469_v12  ;;  %v577_v14 = vpop.f32.mrf.mxu0 }
 0x208   : > { %v583_v15 = vmul.f32 %v577_v14, %v577_v14 }
 0x209   : > { %v1008_v16 = vpop.f32.mrf.mxu1  ;;  %v1021_v17 = vpop.f32.mrf.mxu0 }
 0x20a   : > { %v584_v18 = vsel %vm395_vm0, %v583_v15, 0.0 }
 0x20b   : > { %585 = vadd.xlane.f32.xlu1 %v584_v18  ;;  %v580_v19 = vpop.f32.mrf.mxu0 }
 0x20d   : > { %v1022_v20 = vpop.f32.mrf.mxu0 }
 0x290   : > { %v471_v21 = vpop.xlane.xlu0 %470 }
 0x291   : > { %v472_v22 = vmax.f32 %v471_v21, 1e-24 }
 0x293   : > { %1081 = vrsqrt.f32 %v472_v22 }
 0x294   : > { %v586_v23 = vpop.xlane.xlu1 %585 }
 0x295   : > { %v587_v24 = vmax.f32 %v586_v23, 1e-24 }
 0x297   : > { %1083 = vrsqrt.f32 %v587_v24 }
 0x2a0   : > { %v1082_v25 = vpop.eup %1081 }
 0x2a1   : > { %v474_v26 = vmul.f32 %v1082_v25, %v462_v9 }
 0x2a3   : > { %v475_v27 = vpack.c.bf16 %v474_v26, %v474_v26 }
 0x2a4   : > { %v1084_v28 = vpop.eup %1083 }
 0x2a5   : > { %1012 = vmatmul.mubr.msk.bf16.vlgmr.msra.gmra.mxu1 %vm372_vm3, %v475_v27  ;;  %v589_v29 = vmul.f32 %v1084_v28, %v577_v14 }
 0x2a6   : > { %1024 = vmatpush3.bf16.xpose.msra.mxu1 %v480_v8  ;;  %1025 = vmatprep.mubr.msk.bf16.mxu1 %vm1192_vm1, %v1191_v3 }
 0x2a7   : > { %v590_v30 = vpack.c.bf16 %v589_v29, %v589_v29 }
 0x2ad   : > { %1026 = vmatmul.mubr.msk.bf16.vlgmr.msra.gmra.mxu1 %vm372_vm3, %v590_v30 }
 0x365   : > { %v1334_v31 = vpop.f32.mrf.mxu1 }
 0x366   : > { %v972_v32 = vadd.f32 -1.0, %v1334_v31 }
 0x367   : > { %v1013_v33 = vpop.f32.mrf.mxu1 }
 0x368   : > { %v636_v34 = vmul.f32 10.0, %v972_v32 }
 0x369   : > { %v519_v35 = vpop.f32.mrf.mxu1 }
 0x36a   : > { %v638_v36 = vmul.f32 1.442695, %v636_v34 }
 0x36b   : > { %v1014_v37 = vpop.f32.mrf.mxu1 }
 0x36c   : > { %1085 = vpow2.f32 %v638_v36 }
 0x36d   : > { %v1337_v38 = vpop.f32.mrf.mxu1 }
 0x36e   : > { %v973_v39 = vadd.f32 -1.0, %v1337_v38 }
 0x36f   : > { %v1027_v40 = vpop.f32.mrf.mxu1 }
 0x370   : > { %v637_v3 = vmul.f32 10.0, %v973_v39 }
 0x371   : > { %v631_v41 = vpop.f32.mrf.mxu1 }
 0x372   : > { %v640_v42 = vmul.f32 1.442695, %v637_v3 }
 0x373   : > { %v1028_v43 = vpop.f32.mrf.mxu1 }
 0x374   : > { %1087 = vpow2.f32 %v640_v42 }
 0x379   : > { %v1340_v44 = vpop.eup %1085 }
 0x381   : > { %v1342_v45 = vpop.eup %1087 }
 0x382 LB: >> { %vm656_vm4 = vcmask 125952   ;;  %v654_v49 = vmul.f32 %v1181_v47, %v1340_v44  ;;  %v655_v50 = vmul.f32 %v1177_v46, %v1342_v45  ;;  %s860_s24 = sadd.s32 1, %s1189_s24   ;;  %s1189_s24 = sphi %s1350_s24, %s860_s24   ;;  %v1185_v48 = vphi %v1348_v48, %v1470_v48   ;;  %v1181_v47 = vphi %v1346_v47, %v1469_v47   ;;  %v1177_v46 = vphi %v1344_v46, %v1468_v46  }
 0x383   : >> { %p648_p4 = scmp.lt.s32.totalorder %s860_s24, 10 }
 0x384   : >> { %v657_v51 = vsel %vm656_vm4, %v654_v49, 0.0  ;;  %v658_v52 = vsel %vm656_vm4, %v655_v50, 0.0 }
 0x385   : >> { %v659_v53 = vadd.f32 %v658_v52, %v657_v51 }
 0x387   : >> { %1089 = vrcp.f32 %v659_v53 }
 0x394   : >> { %v1090_v54 = vpop.eup %1089 }
 0x395   : >> { %v661_v55 = vmul.f32 0.0625, %v1090_v54 }
 0x397   : >> { %v662_v56 = vmul.f32 %v1340_v44, %v661_v55  ;;  %v663_v57 = vmul.f32 %v1342_v45, %v661_v55 }
 0x399   : >> { %v664_v58 = vsel %vm656_vm4, %v662_v56, 0.0  ;;  %v667_v59 = vsel %vm656_vm4, %v663_v57, 0.0 }
 0x39a   : >> { %665 = vadd.xlane.f32.xlu0 %v664_v58 }
 0x39e   : >> { %668 = vadd.xlane.f32.xlu0 %v667_v59 }
 0x423   : >> { %v666_v60 = vpop.xlane.xlu0 %665 }
 0x424   : >> { %1091 = vrcp.f32 %v666_v60 }
 0x427   : >> { %v669_v61 = vpop.xlane.xlu0 %668 }
 0x428   : >> { %1093 = vrcp.f32 %v669_v61 }
 0x431   : >> { %v1092_v62 = vpop.eup %1091 }
 0x432   : >> { %v672_v63 = vmul.f32 0.5, %v1092_v62 }
 0x434   : >> { %v674_v1 = vmul.f32 %v1340_v44, %v672_v63 }
 0x435   : >> { %v1094_v0 = vpop.eup %1093 }
 0x436   : >> { %v673_v2 = vmul.f32 0.5, %v1094_v0  ;;  %v676_v5 = vsel %vm656_vm4, %v674_v1, 0.0 }
 0x438   : >> { %v675_v4 = vmul.f32 %v1342_v45, %v673_v2 }
 0x43a   : >> { %v677_v6 = vsel %vm656_vm4, %v675_v4, 0.0 }
 0x43b   : >> { %v678_v7 = vadd.f32 %v677_v6, %v676_v5 }
 0x43d   : >> { %1095 = vrcp.f32 %v678_v7 }
 0x44a   : >> { %v1096_v8 = vpop.eup %1095 }
 0x44b   : >> { %v680_v9 = vmul.f32 0.0625, %v1096_v8 }
 0x44d   : >> { %v681_v10 = vmul.f32 %v1340_v44, %v680_v9  ;;  %v682_v12 = vmul.f32 %v1342_v45, %v680_v9 }
 0x44f   : >> { %v683_v11 = vsel %vm656_vm4, %v681_v10, 0.0  ;;  %v686_v13 = vsel %vm656_vm4, %v682_v12, 0.0 }
 0x450   : >> { %684 = vadd.xlane.f32.xlu1 %v683_v11 }
 0x454   : >> { %687 = vadd.xlane.f32.xlu1 %v686_v13 }
 0x4d9   : >> { %v685_v14 = vpop.xlane.xlu1 %684 }
 0x4da   : >> { %1097 = vrcp.f32 %v685_v14 }
 0x4dd   : >> { %v688_v15 = vpop.xlane.xlu1 %687 }
 0x4de   : >> { %1099 = vrcp.f32 %v688_v15 }
 0x4e7   : >> { %v1098_v16 = vpop.eup %1097 }
 0x4e8   : >> { %v691_v17 = vmul.f32 0.5, %v1098_v16 }
 0x4ea   : >> { %v693_v19 = vmul.f32 %v1340_v44, %v691_v17 }
 0x4eb   : >> { %v1100_v18 = vpop.eup %1099 }
 0x4ec   : >> { %v692_v20 = vmul.f32 0.5, %v1100_v18  ;;  %v695_v22 = vsel %vm656_vm4, %v693_v19, 0.0 }
 0x4ee   : >> { %v694_v21 = vmul.f32 %v1342_v45, %v692_v20 }
 0x4f0   : >> { %v696_v23 = vsel %vm656_vm4, %v694_v21, 0.0 }
 0x4f1   : >> { %v697_v24 = vadd.f32 %v696_v23, %v695_v22 }
 0x4f3   : >> { %1101 = vrcp.f32 %v697_v24 }
 0x500   : >> { %v1102_v25 = vpop.eup %1101 }
 0x501   : >> { %v699_v26 = vmul.f32 0.0625, %v1102_v25 }
 0x503   : >> { %v701_v27 = vmul.f32 %v1342_v45, %v699_v26  ;;  %v700_v28 = vmul.f32 %v1340_v44, %v699_v26 }
 0x505   : >> { %v705_v29 = vsel %vm656_vm4, %v701_v27, 0.0  ;;  %v702_v30 = vsel %vm656_vm4, %v700_v28, 0.0 }
 0x506   : >> { %706 = vadd.xlane.f32.xlu1 %v705_v29  ;;  %703 = vadd.xlane.f32.xlu0 %v702_v30 }
 0x58f   : >> { %v707_v32 = vpop.xlane.xlu1 %706  ;;  %v704_v33 = vpop.xlane.xlu0 %703 }
 0x590   : >> { %1103 = vrcp.f32 %v707_v32 }
 0x591   : >> { %1105 = vrcp.f32 %v704_v33 }
 0x59d   : >> { %v1104_v34 = vpop.eup %1103 }
 0x59e   : >> { %v1106_v35 = vpop.eup %1105  ;;  %v711_v36 = vmul.f32 0.5, %v1104_v34 }
 0x59f   : >> { %v710_v37 = vmul.f32 0.5, %v1106_v35 }
 0x5a0   : >> { %v713_v39 = vmul.f32 %v1342_v45, %v711_v36 }
 0x5a1   : >> { %v712_v40 = vmul.f32 %v1340_v44, %v710_v37 }
 0x5a2   : >> { %v715_v3 = vsel %vm656_vm4, %v713_v39, 0.0 }
 0x5a3   : >> { %v714_v41 = vsel %vm656_vm4, %v712_v40, 0.0 }
 0x5a4   : >> { %v716_v42 = vadd.f32 %v715_v3, %v714_v41 }
 0x5a6   : >> { %1107 = vrcp.f32 %v716_v42 }
 0x5b3   : >> { %v1108_v43 = vpop.eup %1107 }
 0x5b4   : >> { %v718_v46 = vmul.f32 0.0625, %v1108_v43 }
 0x5b6   : >> { %v720_v47 = vmul.f32 %v1342_v45, %v718_v46  ;;  %v719_v49 = vmul.f32 %v1340_v44, %v718_v46 }
 0x5b8   : >> { %v724_v50 = vsel %vm656_vm4, %v720_v47, 0.0  ;;  %v721_v51 = vsel %vm656_vm4, %v719_v49, 0.0 }
 0x5b9   : >> { %725 = vadd.xlane.f32.xlu1 %v724_v50  ;;  %722 = vadd.xlane.f32.xlu0 %v721_v51 }
 0x642   : >> { %v726_v52 = vpop.xlane.xlu1 %725  ;;  %v723_v53 = vpop.xlane.xlu0 %722 }
 0x643   : >> { %1109 = vrcp.f32 %v726_v52 }
 0x644   : >> { %1111 = vrcp.f32 %v723_v53 }
 0x650   : >> { %v1110_v54 = vpop.eup %1109 }
 0x651   : >> { %v1112_v55 = vpop.eup %1111  ;;  %v730_v56 = vmul.f32 0.5, %v1110_v54 }
 0x652   : >> { %v729_v57 = vmul.f32 0.5, %v1112_v55 }
 0x653   : >> { %v732_v58 = vmul.f32 %v1342_v45, %v730_v56 }
 0x654   : >> { %v731_v59 = vmul.f32 %v1340_v44, %v729_v57 }
 0x655   : >> { %v734_v60 = vsel %vm656_vm4, %v732_v58, 0.0 }
 0x656   : >> { %v733_v61 = vsel %vm656_vm4, %v731_v59, 0.0 }
 0x657   : >> { %v735_v62 = vadd.f32 %v734_v60, %v733_v61 }
 0x659   : >> { %1113 = vrcp.f32 %v735_v62 }
 0x666   : >> { %v1114_v63 = vpop.eup %1113 }
 0x667   : >> { %v737_v0 = vmul.f32 0.0625, %v1114_v63 }
 0x669   : >> { %v739_v1 = vmul.f32 %v1342_v45, %v737_v0  ;;  %v738_v2 = vmul.f32 %v1340_v44, %v737_v0 }
 0x66b   : >> { %v743_v4 = vsel %vm656_vm4, %v739_v1, 0.0  ;;  %v740_v5 = vsel %vm656_vm4, %v738_v2, 0.0 }
 0x66c   : >> { %744 = vadd.xlane.f32.xlu1 %v743_v4  ;;  %741 = vadd.xlane.f32.xlu0 %v740_v5 }
 0x6f5   : >> { %v745_v6 = vpop.xlane.xlu1 %744  ;;  %v742_v7 = vpop.xlane.xlu0 %741 }
 0x6f6   : >> { %1115 = vrcp.f32 %v745_v6 }
 0x6f7   : >> { %1117 = vrcp.f32 %v742_v7 }
 0x703   : >> { %v1116_v8 = vpop.eup %1115 }
 0x704   : >> { %v1118_v9 = vpop.eup %1117  ;;  %v749_v10 = vmul.f32 0.5, %v1116_v8 }
 0x705   : >> { %v748_v11 = vmul.f32 0.5, %v1118_v9 }
 0x706   : >> { %v751_v12 = vmul.f32 %v1342_v45, %v749_v10 }
 0x707   : >> { %v750_v13 = vmul.f32 %v1340_v44, %v748_v11 }
 0x708   : >> { %v753_v14 = vsel %vm656_vm4, %v751_v12, 0.0 }
 0x709   : >> { %v752_v15 = vsel %vm656_vm4, %v750_v13, 0.0 }
 0x70a   : >> { %v754_v16 = vadd.f32 %v753_v14, %v752_v15 }
 0x70c   : >> { %1119 = vrcp.f32 %v754_v16 }
 0x719   : >> { %v1120_v17 = vpop.eup %1119 }
 0x71a   : >> { %v756_v18 = vmul.f32 0.0625, %v1120_v17 }
 0x71c   : >> { %v758_v19 = vmul.f32 %v1342_v45, %v756_v18  ;;  %v757_v20 = vmul.f32 %v1340_v44, %v756_v18 }
 0x71e   : >> { %v762_v21 = vsel %vm656_vm4, %v758_v19, 0.0  ;;  %v759_v22 = vsel %vm656_vm4, %v757_v20, 0.0 }
 0x71f   : >> { %763 = vadd.xlane.f32.xlu1 %v762_v21  ;;  %760 = vadd.xlane.f32.xlu0 %v759_v22 }
 0x7a8   : >> { %v764_v23 = vpop.xlane.xlu1 %763  ;;  %v761_v24 = vpop.xlane.xlu0 %760 }
 0x7a9   : >> { %1121 = vrcp.f32 %v764_v23 }
 0x7aa   : >> { %1123 = vrcp.f32 %v761_v24 }
 0x7b6   : >> { %v1122_v25 = vpop.eup %1121 }
 0x7b7   : >> { %v1124_v26 = vpop.eup %1123  ;;  %v768_v27 = vmul.f32 0.5, %v1122_v25 }
 0x7b8   : >> { %v767_v28 = vmul.f32 0.5, %v1124_v26 }
 0x7b9   : >> { %v770_v29 = vmul.f32 %v1342_v45, %v768_v27 }
 0x7ba   : >> { %v769_v30 = vmul.f32 %v1340_v44, %v767_v28 }
 0x7bb   : >> { %v772_v32 = vsel %vm656_vm4, %v770_v29, 0.0 }
 0x7bc   : >> { %v771_v33 = vsel %vm656_vm4, %v769_v30, 0.0 }
 0x7bd   : >> { %v773_v34 = vadd.f32 %v772_v32, %v771_v33 }
 0x7bf   : >> { %1125 = vrcp.f32 %v773_v34 }
 0x7cc   : >> { %v1126_v35 = vpop.eup %1125 }
 0x7cd   : >> { %v775_v36 = vmul.f32 0.0625, %v1126_v35 }
 0x7cf   : >> { %v777_v37 = vmul.f32 %v1342_v45, %v775_v36  ;;  %v776_v39 = vmul.f32 %v1340_v44, %v775_v36 }
 0x7d1   : >> { %v781_v40 = vsel %vm656_vm4, %v777_v37, 0.0  ;;  %v778_v3 = vsel %vm656_vm4, %v776_v39, 0.0 }
 0x7d2   : >> { %782 = vadd.xlane.f32.xlu1 %v781_v40  ;;  %779 = vadd.xlane.f32.xlu0 %v778_v3 }
 0x85b   : >> { %v783_v41 = vpop.xlane.xlu1 %782  ;;  %v780_v42 = vpop.xlane.xlu0 %779 }
 0x85c   : >> { %1127 = vrcp.f32 %v783_v41 }
 0x85d   : >> { %1129 = vrcp.f32 %v780_v42 }
 0x869   : >> { %v1128_v43 = vpop.eup %1127 }
 0x86a   : >> { %v1130_v46 = vpop.eup %1129  ;;  %v787_v47 = vmul.f32 0.5, %v1128_v43 }
 0x86b   : >> { %v786_v49 = vmul.f32 0.5, %v1130_v46 }
 0x86c   : >> { %v789_v50 = vmul.f32 %v1342_v45, %v787_v47 }
 0x86d   : >> { %v788_v51 = vmul.f32 %v1340_v44, %v786_v49 }
 0x86e   : >> { %v791_v52 = vsel %vm656_vm4, %v789_v50, 0.0 }
 0x86f   : >> { %v790_v53 = vsel %vm656_vm4, %v788_v51, 0.0 }
 0x870   : >> { %v792_v54 = vadd.f32 %v791_v52, %v790_v53 }
 0x872   : >> { %1131 = vrcp.f32 %v792_v54 }
 0x87f   : >> { %v1132_v55 = vpop.eup %1131 }
 0x880   : >> { %v794_v56 = vmul.f32 0.0625, %v1132_v55 }
 0x882   : >> { %v796_v57 = vmul.f32 %v1342_v45, %v794_v56  ;;  %v795_v58 = vmul.f32 %v1340_v44, %v794_v56 }
 0x884   : >> { %v800_v59 = vsel %vm656_vm4, %v796_v57, 0.0  ;;  %v797_v60 = vsel %vm656_vm4, %v795_v58, 0.0 }
 0x885   : >> { %801 = vadd.xlane.f32.xlu1 %v800_v59  ;;  %798 = vadd.xlane.f32.xlu0 %v797_v60 }
 0x90e   : >> { %v802_v61 = vpop.xlane.xlu1 %801  ;;  %v799_v62 = vpop.xlane.xlu0 %798 }
 0x90f   : >> { %1133 = vrcp.f32 %v802_v61 }
 0x910   : >> { %1135 = vrcp.f32 %v799_v62 }
 0x91c   : >> { %v1134_v63 = vpop.eup %1133 }
 0x91d   : >> { %v1136_v0 = vpop.eup %1135  ;;  %v806_v1 = vmul.f32 0.5, %v1134_v63 }
 0x91e   : >> { %v805_v2 = vmul.f32 0.5, %v1136_v0 }
 0x91f   : >> { %v808_v4 = vmul.f32 %v1342_v45, %v806_v1 }
 0x920   : >> { %v807_v5 = vmul.f32 %v1340_v44, %v805_v2 }
 0x921   : >> { %v810_v6 = vsel %vm656_vm4, %v808_v4, 0.0 }
 0x922   : >> { %v809_v7 = vsel %vm656_vm4, %v807_v5, 0.0 }
 0x923   : >> { %v811_v8 = vadd.f32 %v810_v6, %v809_v7 }
 0x925   : >> { %1137 = vrcp.f32 %v811_v8 }
 0x932   : >> { %v1138_v9 = vpop.eup %1137 }
 0x933   : >> { %v813_v10 = vmul.f32 0.0625, %v1138_v9 }
 0x935   : >> { %v815_v11 = vmul.f32 %v1342_v45, %v813_v10  ;;  %v814_v12 = vmul.f32 %v1340_v44, %v813_v10 }
 0x937   : >> { %v819_v13 = vsel %vm656_vm4, %v815_v11, 0.0  ;;  %v816_v14 = vsel %vm656_vm4, %v814_v12, 0.0 }
 0x938   : >> { %820 = vadd.xlane.f32.xlu1 %v819_v13  ;;  %817 = vadd.xlane.f32.xlu0 %v816_v14 }
 0x9c1   : >> { %v821_v15 = vpop.xlane.xlu1 %820  ;;  %v818_v16 = vpop.xlane.xlu0 %817 }
 0x9c2   : >> { %1139 = vrcp.f32 %v821_v15 }
 0x9c3   : >> { %1141 = vrcp.f32 %v818_v16 }
 0x9cf   : >> { %v1140_v17 = vpop.eup %1139 }
 0x9d0   : >> { %v1142_v18 = vpop.eup %1141  ;;  %v825_v19 = vmul.f32 0.5, %v1140_v17 }
 0x9d1   : >> { %v824_v20 = vmul.f32 0.5, %v1142_v18 }
 0x9d2   : >> { %v827_v21 = vmul.f32 %v1342_v45, %v825_v19 }
 0x9d3   : >> { %v826_v22 = vmul.f32 %v1340_v44, %v824_v20 }
 0x9d4   : >> { %v829_v23 = vsel %vm656_vm4, %v827_v21, 0.0 }
 0x9d5   : >> { %v828_v24 = vsel %vm656_vm4, %v826_v22, 0.0 }
 0x9d6   : >> { %v830_v25 = vadd.f32 %v829_v23, %v828_v24 }
 0x9d8   : >> { %1143 = vrcp.f32 %v830_v25 }
 0x9e5   : >> { %v1144_v26 = vpop.eup %1143 }
 0x9e6   : >> { %v832_v27 = vmul.f32 0.0625, %v1144_v26  }
 0x9e8   : >> { %v833_v28 = vmul.f32 %v1340_v44, %v832_v27  ;;  %v845_v29 = vsub.f32 %v832_v27, %v1185_v48  ;;  %v834_v34 = vmul.f32 %v1342_v45, %v832_v27 }
 0x9ea   : >> { %v835_v30 = vsel %vm656_vm4, %v833_v28, 0.0  ;;  %v846_v32 = vand.u32 2147483647, %v845_v29  ;;  %v838_v35 = vsel %vm656_vm4, %v834_v34, 0.0 }
 0x9eb   : >> { %836 = vadd.xlane.f32.xlu1 %v835_v30 }
 0x9ec   : >> { %v847_v33 = vsel %vm656_vm4, %v846_v32, 0.0 }
 0x9ed   : >> { %848 = vadd.xlane.f32.xlu0 %v847_v33 }
 0x9f1   : >> { %839 = vadd.xlane.f32.xlu0 %v838_v35 }
 0xa74   : >> { %v837_v36 = vpop.xlane.xlu1 %836 }
 0xa75   : >> { %1145 = vrcp.f32 %v837_v36 }
 0xa76   : >> { %v849_v37 = vpop.xlane.xlu0 %848 }
 0xa77   : >> { %v850_v39 = vrot.slane %v849_v37, 4 }
 0xa79   : >> { %v851_v40 = vadd.f32 %v850_v39, %v849_v37 }
 0xa7a   : >> { %v840_v3 = vpop.xlane.xlu0 %839 }
 0xa7b   : >> { %v852_v48 = vrot.slane %v851_v40, 2  ;;  %1147 = vrcp.f32 %v840_v3 }
 0xa7d   : >> { %v853_v41 = vadd.f32 %v852_v48, %v851_v40  ;;  %v1470_v48 = vmov %v832_v27 }
 0xa7f   : >> { %v854_v42 = vrot.slane %v853_v41, 1 }
 0xa81   : >> { %v855_v43 = vadd.f32 %v854_v42, %v853_v41 }
 0xa82   : >> { %v1146_v46 = vpop.eup %1145 }
 0xa83   : >> { %v843_v49 = vmul.f32 0.5, %v1146_v46   ;;  %1029 = vpush %v855_v43 }
 0xa88   : >> { %v1148_v47 = vpop.eup %1147 }
 0xa89   : >> { %v844_v50 = vmul.f32 0.5, %v1148_v47   ;;  %v1469_v47 = vmov %v843_v49 }
 0xa8b   : >> { %v1468_v46 = vmov %v844_v50 }
 0xab4   : >> { %s1030_s25 = spop %1029 }
 0xab5   : >> { %s859_s26 = smul.f32 0.015625, %s1030_s25 }
 0xab7   : >> { %p649_p5 = scmp.ge.f32.partialorder %s859_s26, 0.01 }
 0xab9   : >> { %p650_p6 = pnand %p649_p5, %p648_p4 }
 0xaba   : > { %v863_v51 = vmul.f32 (%p650_p6), %v833_v28, %v1334_v31  ;;  %v864_v52 = vmul.f32 (%p650_p6), %v834_v34, %v1337_v38  ;;  %s878_s27 = sld [smem:[#allocation2]] (%p650_p6)  ;;  %vm874_vm5 = vcmask (%p650_p6), 1043456   ;;  %vm883_vm6 = vcmask (%p650_p6), 3072  }
 0xabb   : > { %653 = sbr.rel (!%p650_p6) target bundleno = 898 (0x382), region = 90 }
 0xabc   : > { %v866_v53 = vsel (%p650_p6), %vm656_vm4, %v863_v51, 0.0  ;;  %v869_v54 = vsel (%p650_p6), %vm656_vm4, %v864_v52, 0.0 }
 0xabd   : > { %867 = vadd.xlane.f32.xlu0 (%p650_p6), %v866_v53 }
 0xac0   : > { %v879_v55 = vstv %s878_s27 }
 0xac1   : > { %870 = vadd.xlane.f32.xlu0 %v869_v54  ;;  %v880_v56 = vmul.f32 1.442695, %v879_v55 }
 0xac3   : > { %1149 = vpow2.f32 %v880_v56 }
 0xad0   : > { %v1150_v44 = vpop.eup %1149 }
 0xb46   : > { %v868_v57 = vpop.xlane.xlu0 %867 }
 0xb47   : > { %v872_v58 = vmul.f32 %v868_v57, %v843_v49 }
 0xb49   : > { %v875_v31 = vsel %vm874_vm5, %v872_v58, 0.0 }
 0xb4a   : > { %v871_v59 = vpop.xlane.xlu0 %870 }
 0xb4b   : > { %v873_v60 = vmul.f32 %v871_v59, %v844_v50 }
 0xb4d   : > { %v876_v45 = vsel %vm874_vm5, %v873_v60, 0.0 }
 0xb4e   : > { %v877_v38 = vadd.f32 %v876_v45, %v875_v31 }
 0xb50   : > { %v882_v61 = vmul.f32 %v1150_v44, %v877_v38 }
 0xb52   : > { %884 = vst.msk [vmem:[%s1288_s7] sm:$0xf] %vm883_vm6, %v882_v61 }
 0xb53 PF: > { %s19_s29 = sadd.s32 1, %s1173_s29  }
 0xb54   : > { %p16_p7 = scmp.ge.s32.totalorder %s19_s29, 4  }
 0xb56   :  { %18 = sbr.rel (!%p16_p7) target bundleno = 2 (0x2), region = 101 }

</bundles_post_ra>
